<compile_context>
chip_gen: v7x
topology: tpu7x:2x2x1
jax: 0.10.0
libtpu: 0.0.40
codegen_flags: <defaults>
</compile_context>

<pallas_src>
import functools

import jax
import jax.numpy as jnp
from jax.experimental import pallas as pl
from jax.experimental.pallas import tpu as pltpu


def _round_up(x, m):
    return ((x + m - 1) // m) * m


def _policy_kernel(x_ref, w1_ref, b1_ref, w2_ref, b2_ref, w3_ref, b3_ref,
                   ma_ref, o_ref):
    """One batch tile of the 3-layer MLP policy head."""
    x = x_ref[...]                                            # (TB, S) f32

    # Layer 1: bf16 MXU dot, f32 accumulate, f32 epilogue.
    a = jnp.dot(x.astype(w1_ref.dtype), w1_ref[...],
                preferred_element_type=jnp.float32) + b1_ref[...]
    a = jnp.maximum(a, 0.0)

    # Layer 2.
    a = jnp.dot(a.astype(w2_ref.dtype), w2_ref[...],
                preferred_element_type=jnp.float32) + b2_ref[...]
    a = jnp.maximum(a, 0.0)

    # Layer 3 (output dim padded to a lane-dense 128-wide slab).
    a = jnp.dot(a.astype(w3_ref.dtype), w3_ref[...],
                preferred_element_type=jnp.float32) + b3_ref[...]

    scale = ma_ref[0, 0]                                      # SMEM scalar read
    o_ref[...] = (scale * jnp.tanh(a)).astype(o_ref.dtype)


@functools.partial(jax.jit, static_argnames=("block_b",))
def deterministic_policy_forward(state, params, max_action, *, block_b=512):
    """state: (B, state_dim) float32. params: dict of w1,b1,w2,b2,w3,b3.

    max_action may be a traced scalar; it is passed to the kernel via SMEM.
    """
    w1, b1 = params["w1"], params["b1"]
    w2, b2 = params["w2"], params["b2"]
    w3, b3 = params["w3"], params["b3"]

    B, S = state.shape
    H = w1.shape[1]
    A = w3.shape[1]

    # --- Lane-dense output: pad action dim up to a multiple of 128. ---
    A_pad = _round_up(max(A, 128), 128)
    if A_pad != A:
        w3p = jnp.zeros((H, A_pad), w3.dtype).at[:, :A].set(w3)
        b3p = jnp.zeros((1, A_pad), jnp.float32).at[:, :A].set(b3)
    else:
        w3p, b3p = w3, b3

    # --- Batch tiling: multiple of 8 sublanes, capped at block_b. ---
    TB = min(block_b, _round_up(B, 8))
    TB = _round_up(TB, 8)
    Bp = _round_up(B, TB)
    if Bp != B:
        state_p = jnp.zeros((Bp, S), state.dtype).at[:B, :].set(state)
    else:
        state_p = state

    grid = (Bp // TB,)

    # max_action as an SMEM scalar -> no recompile when the bound changes.
    ma = jnp.asarray(max_action, jnp.float32).reshape(1, 1)

    out = pl.pallas_call(
        _policy_kernel,
        out_shape=jax.ShapeDtypeStruct((Bp, A_pad), jnp.float32),
        grid=grid,
        in_specs=[
            pl.BlockSpec((TB, S), lambda i: (i, 0)),         # state: batch-tiled
            pl.BlockSpec((S, H), lambda i: (0, 0)),          # w1 (resident)
            pl.BlockSpec((1, H), lambda i: (0, 0)),          # b1 (resident)
            pl.BlockSpec((H, H), lambda i: (0, 0)),          # w2 (resident)
            pl.BlockSpec((1, H), lambda i: (0, 0)),          # b2 (resident)
            pl.BlockSpec((H, A_pad), lambda i: (0, 0)),      # w3 padded (resident)
            pl.BlockSpec((1, A_pad), lambda i: (0, 0)),      # b3 padded (resident)
            pl.BlockSpec(memory_space=pltpu.MemorySpace.SMEM),  # max_action scalar
        ],
        out_specs=pl.BlockSpec((TB, A_pad), lambda i: (i, 0)),
        compiler_params=pltpu.CompilerParams(
            # Batch blocks are independent -> shardable across v7x's 2 TCs.
            dimension_semantics=("parallel",),
        ),
    )(state_p, w1, b1, w2, b2, w3p, b3p, ma)

    # Slice padded batch rows / padded action columns back off.
    return out[:B, :A]


def _xavier_uniform(key, fan_in, fan_out, gain=1.0):
    # matches torch.nn.init.xavier_uniform_: U(-a, a), a = gain*sqrt(6/(fan_in+fan_out))
    bound = gain * (6.0 / (fan_in + fan_out)) ** 0.5
    return jax.random.uniform(
        key, (fan_in, fan_out), dtype=jnp.float32, minval=-bound, maxval=bound
    )


def init_params(key, state_dim, action_dim, hidden_size,
                weight_dtype=jnp.bfloat16):
    """Weights in bf16 (MXU-native on v6e/v7x), biases in f32."""
    k1, k2, k3 = jax.random.split(key, 3)
    return {
        "w1": _xavier_uniform(k1, state_dim, hidden_size).astype(weight_dtype),
        "b1": jnp.zeros((1, hidden_size), jnp.float32),
        "w2": _xavier_uniform(k2, hidden_size, hidden_size).astype(weight_dtype),
        "b2": jnp.zeros((1, hidden_size), jnp.float32),
        "w3": _xavier_uniform(k3, hidden_size, action_dim).astype(weight_dtype),
        "b3": jnp.zeros((1, action_dim), jnp.float32),
    }


def reference_forward(state, params, max_action):
    """Pure-JAX reference mirroring the kernel's bf16-dot / f32-epilogue math."""
    def dot(x, w):
        return jnp.dot(x.astype(w.dtype), w, preferred_element_type=jnp.float32)

    a = jnp.maximum(dot(state, params["w1"]) + params["b1"], 0.0)
    a = jnp.maximum(dot(a, params["w2"]) + params["b2"], 0.0)
    return max_action * jnp.tanh(dot(a, params["w3"]) + params["b3"])


if __name__ == "__main__":
    key = jax.random.PRNGKey(0)
    k_state, k_params, k_big = jax.random.split(key, 3)

    batch = 8
    state_dim = 16
    action_dim = 4
    hidden_size = 32
    max_action = 2.0

    params = init_params(k_params, state_dim, action_dim, hidden_size)

    # --- small batch (single grid step) ---
    state = jax.random.normal(k_state, (batch, state_dim), dtype=jnp.float32)
    out = deterministic_policy_forward(state, params, max_action)
    out = jax.block_until_ready(out)
    ref = reference_forward(state, params, max_action)
    assert out.shape == (batch, action_dim)
    assert jnp.allclose(out, ref, atol=1e-2, rtol=1e-2)

    # --- non-multiple batch with a multi-step batch grid (exercises padding) ---
    big_b = 200
    state_big = jax.random.normal(k_big, (big_b, state_dim), dtype=jnp.float32)
    out_big = deterministic_policy_forward(state_big, params, max_action,
                                           block_b=64)
    out_big = jax.block_until_ready(out_big)
    ref_big = reference_forward(state_big, params, max_action)
    assert out_big.shape == (big_b, action_dim)
    assert jnp.allclose(out_big, ref_big, atol=1e-2, rtol=1e-2)

    print("KERNEL_OK")
</pallas_src>

<mosaic_0001>
module attributes {stable_mosaic.version = 11 : i64} {
  func.func @_policy_kernel(%arg0: i32, %arg1: memref<8x16xf32, #tpu.memory_space<vmem>>, %arg2: memref<16x32xbf16, #tpu.memory_space<vmem>>, %arg3: memref<1x32xf32, #tpu.memory_space<vmem>>, %arg4: memref<32x32xbf16, #tpu.memory_space<vmem>>, %arg5: memref<1x32xf32, #tpu.memory_space<vmem>>, %arg6: memref<32x128xbf16, #tpu.memory_space<vmem>>, %arg7: memref<1x128xf32, #tpu.memory_space<vmem>>, %arg8: memref<1x1xf32, #tpu.memory_space<smem>>, %arg9: memref<8x128xf32, #tpu.memory_space<vmem>>) attributes {dimension_semantics = [#tpu.dimension_semantics<parallel>], iteration_bounds = array<i64: 1>, scalar_prefetch = 0 : i64, scratch_operands = 0 : i64, tpu.core_type = #tpu.core_type<tc>, window_params = [{transform_indices = @transform_0, window_bounds = array<i64: 8, 16>}, {pipeline_mode = #tpu.pipeline_mode<synchronous>, transform_indices = @transform_1, window_bounds = array<i64: 16, 32>}, {pipeline_mode = #tpu.pipeline_mode<synchronous>, transform_indices = @transform_2, window_bounds = array<i64: 1, 32>}, {pipeline_mode = #tpu.pipeline_mode<synchronous>, transform_indices = @transform_3, window_bounds = array<i64: 32, 32>}, {pipeline_mode = #tpu.pipeline_mode<synchronous>, transform_indices = @transform_4, window_bounds = array<i64: 1, 32>}, {pipeline_mode = #tpu.pipeline_mode<synchronous>, transform_indices = @transform_5, window_bounds = array<i64: 32, 128>}, {pipeline_mode = #tpu.pipeline_mode<synchronous>, transform_indices = @transform_6, window_bounds = array<i64: 1, 128>}, {transform_indices = @transform_7, window_bounds = array<i64: 1, 1>}, {transform_indices = @transform_8, window_bounds = array<i64: 8, 128>}]} {
    %c0 = arith.constant 0 : index
    %c0_0 = arith.constant 0 : index
    %0 = vector.load %arg1[%c0, %c0_0] : memref<8x16xf32, #tpu.memory_space<vmem>>, vector<8x16xf32>
    %1 = arith.truncf %0 : vector<8x16xf32> to vector<8x16xbf16>
    %c0_1 = arith.constant 0 : index
    %c0_2 = arith.constant 0 : index
    %2 = vector.load %arg2[%c0_1, %c0_2] : memref<16x32xbf16, #tpu.memory_space<vmem>>, vector<16x32xbf16>
    %cst = arith.constant dense<0.000000e+00> : vector<8x32xf32>
    %3 = tpu.matmul %1, %2, %cst {dimension_numbers = #tpu.dot_dimension_numbers<[1], [0], [0], [1], [0, 0, 1, 1], [], []>} : vector<8x16xbf16>, vector<16x32xbf16>, vector<8x32xf32> -> vector<8x32xf32>
    %c0_3 = arith.constant 0 : index
    %c0_4 = arith.constant 0 : index
    %4 = vector.load %arg3[%c0_3, %c0_4] : memref<1x32xf32, #tpu.memory_space<vmem>>, vector<1x32xf32>
    %5 = vector.broadcast %4 : vector<1x32xf32> to vector<8x32xf32>
    %6 = arith.addf %3, %5 : vector<8x32xf32>
    %cst_5 = arith.constant 0.000000e+00 : f32
    %7 = vector.broadcast %cst_5 : f32 to vector<8x32xf32>
    %8 = arith.maximumf %6, %7 : vector<8x32xf32>
    %9 = arith.truncf %8 : vector<8x32xf32> to vector<8x32xbf16>
    %c0_6 = arith.constant 0 : index
    %c0_7 = arith.constant 0 : index
    %10 = vector.load %arg4[%c0_6, %c0_7] : memref<32x32xbf16, #tpu.memory_space<vmem>>, vector<32x32xbf16>
    %cst_8 = arith.constant dense<0.000000e+00> : vector<8x32xf32>
    %11 = tpu.matmul %9, %10, %cst_8 {dimension_numbers = #tpu.dot_dimension_numbers<[1], [0], [0], [1], [0, 0, 1, 1], [], []>} : vector<8x32xbf16>, vector<32x32xbf16>, vector<8x32xf32> -> vector<8x32xf32>
    %c0_9 = arith.constant 0 : index
    %c0_10 = arith.constant 0 : index
    %12 = vector.load %arg5[%c0_9, %c0_10] : memref<1x32xf32, #tpu.memory_space<vmem>>, vector<1x32xf32>
    %13 = vector.broadcast %12 : vector<1x32xf32> to vector<8x32xf32>
    %14 = arith.addf %11, %13 : vector<8x32xf32>
    %cst_11 = arith.constant 0.000000e+00 : f32
    %15 = vector.broadcast %cst_11 : f32 to vector<8x32xf32>
    %16 = arith.maximumf %14, %15 : vector<8x32xf32>
    %17 = arith.truncf %16 : vector<8x32xf32> to vector<8x32xbf16>
    %c0_12 = arith.constant 0 : index
    %c0_13 = arith.constant 0 : index
    %18 = vector.load %arg6[%c0_12, %c0_13] : memref<32x128xbf16, #tpu.memory_space<vmem>>, vector<32x128xbf16>
    %cst_14 = arith.constant dense<0.000000e+00> : vector<8x128xf32>
    %19 = tpu.matmul %17, %18, %cst_14 {dimension_numbers = #tpu.dot_dimension_numbers<[1], [0], [0], [1], [0, 0, 1, 1], [], []>} : vector<8x32xbf16>, vector<32x128xbf16>, vector<8x128xf32> -> vector<8x128xf32>
    %c0_15 = arith.constant 0 : index
    %c0_16 = arith.constant 0 : index
    %20 = vector.load %arg7[%c0_15, %c0_16] : memref<1x128xf32, #tpu.memory_space<vmem>>, vector<1x128xf32>
    %21 = vector.broadcast %20 : vector<1x128xf32> to vector<8x128xf32>
    %22 = arith.addf %19, %21 : vector<8x128xf32>
    %c0_17 = arith.constant 0 : index
    %c0_18 = arith.constant 0 : index
    %23 = memref.load %arg8[%c0_17, %c0_18] : memref<1x1xf32, #tpu.memory_space<smem>>
    %24 = math.tanh %22 : vector<8x128xf32>
    %25 = vector.broadcast %23 : f32 to vector<8x128xf32>
    %26 = arith.mulf %25, %24 : vector<8x128xf32>
    %c0_19 = arith.constant 0 : index
    %c0_20 = arith.constant 0 : index
    %27 = vector.load %arg9[%c0_19, %c0_20] : memref<8x128xf32, #tpu.memory_space<vmem>>, vector<8x128xf32>
    tpu.vector_store %arg9[%c0_19, %c0_20], %26 {strides = array<i32>} : memref<8x128xf32, #tpu.memory_space<vmem>>, vector<8x128xf32>,
    return
  }
  func.func @transform_0(%arg0: i32) -> (i32, i32) {
    %c0_i32 = arith.constant 0 : i32
    %c0_i32_0 = arith.constant 0 : i32
    return %arg0, %c0_i32 : i32, i32
  }
  func.func @transform_1(%arg0: i32) -> (i32, i32) {
    %c0_i32 = arith.constant 0 : i32
    %c0_i32_0 = arith.constant 0 : i32
    %c0_i32_1 = arith.constant 0 : i32
    return %c0_i32, %c0_i32_0 : i32, i32
  }
  func.func @transform_2(%arg0: i32) -> (i32, i32) {
    %c0_i32 = arith.constant 0 : i32
    %c0_i32_0 = arith.constant 0 : i32
    %c0_i32_1 = arith.constant 0 : i32
    return %c0_i32, %c0_i32_0 : i32, i32
  }
  func.func @transform_3(%arg0: i32) -> (i32, i32) {
    %c0_i32 = arith.constant 0 : i32
    %c0_i32_0 = arith.constant 0 : i32
    %c0_i32_1 = arith.constant 0 : i32
    return %c0_i32, %c0_i32_0 : i32, i32
  }
  func.func @transform_4(%arg0: i32) -> (i32, i32) {
    %c0_i32 = arith.constant 0 : i32
    %c0_i32_0 = arith.constant 0 : i32
    %c0_i32_1 = arith.constant 0 : i32
    return %c0_i32, %c0_i32_0 : i32, i32
  }
  func.func @transform_5(%arg0: i32) -> (i32, i32) {
    %c0_i32 = arith.constant 0 : i32
    %c0_i32_0 = arith.constant 0 : i32
    %c0_i32_1 = arith.constant 0 : i32
    return %c0_i32, %c0_i32_0 : i32, i32
  }
  func.func @transform_6(%arg0: i32) -> (i32, i32) {
    %c0_i32 = arith.constant 0 : i32
    %c0_i32_0 = arith.constant 0 : i32
    %c0_i32_1 = arith.constant 0 : i32
    return %c0_i32, %c0_i32_0 : i32, i32
  }
  func.func @transform_7(%arg0: i32) -> (i32, i32) {
    %c0_i32 = arith.constant 0 : i32
    %c0_i32_0 = arith.constant 0 : i32
    %c0_i32_1 = arith.constant 0 : i32
    return %c0_i32, %c0_i32_0 : i32, i32
  }
  func.func @transform_8(%arg0: i32) -> (i32, i32) {
    %c0_i32 = arith.constant 0 : i32
    %c0_i32_0 = arith.constant 0 : i32
    return %arg0, %c0_i32 : i32, i32
  }
}

</mosaic_0001>

<bundles_post_ra>
// kernel: deterministic_policy_forward.1
= control target key start
LH: loop header
LB: loop body
LE: loop exit
PB: predicated region body
PF: predicated region fallthrough
CT: control target
= control target key end

     0   :  { %v288_v0 = vmov 0.0   ;;  %vm289_vm0 = vmmov 0   ;;  %vm48_vm1 = vcmask 130048   ;;  %vm117_vm2 = vcmask 261120   ;;  %s368_s1 = inlined_call_operand.vmem [shape: bf16[16,32], index: 1, kind: input, shape index: {}]   ;;  %s369_s0 = inlined_call_operand.vmem [shape: f32[8,16], index: 0, kind: input, shape index: {}]   ;;  %s370_s3 = inlined_call_operand.vmem [shape: bf16[32,32], index: 3, kind: input, shape index: {}]   ;;  %s371_s5 = inlined_call_operand.vmem [shape: bf16[32,128], index: 5, kind: input, shape index: {}]   ;;  %s372_s2 = inlined_call_operand.vmem [shape: f32[1,32], index: 2, kind: input, shape index: {}]   ;;  %s373_s4 = inlined_call_operand.vmem [shape: f32[1,32], index: 4, kind: input, shape index: {}]   ;;  %s374_s6 = inlined_call_operand.vmem [shape: f32[1,128], index: 6, kind: input, shape index: {}]   ;;  %s375_s7 = inlined_call_operand.<no memory space> [shape: f32[1,1], index: 7, kind: input, shape index: {}]   ;;  %s376_s8 = inlined_call_operand.vmem [shape: f32[8,128], index: 8, kind: output, shape index: {}]  }
   0x1   :  { %257 = vmatprep.subr.bf16.mxu0 %v288_v0  ;;  %v281_v1 = vld [vmem:[%s368_s1] sm:$0xff]   ;;  %259 = vmatprep.mubr.msk.bf16.mxu0 %vm289_vm0, %v288_v0  ;;  %v283_v5 = vld [vmem:[%s370_s3 + $0x8] sm:$0xff]   ;;  %v231_v30 = vstv %s375_s7 }
   0x2   :  { %v31_v2 = vld [vmem:[%s369_s0] sm:$0xff]  ;;  %263 = vmatprep.subr.bf16.mxu1 %v288_v0  ;;  %267 = vmatprep.mubr.msk.bf16.mxu1 %vm289_vm0, %v288_v0  ;;  %v285_v15 = vld [vmem:[%s371_s5 + $0x8] sm:$0xff]  }
   0x3   :  { %258 = vmatpush3.bf16.msra.mxu0 %v281_v1  ;;  %v32_v3 = vpack.c.bf16 %v31_v2, %v31_v2  ;;  %v282_v4 = vld [vmem:[%s370_s3] sm:$0xff]  }
   0x4   :  { %271 = vmatprep.subr.bf16.mxu0 %v288_v0  ;;  %264 = vmatpush3.bf16.msra.mxu1 %v282_v4  ;;  %v284_v6 = vld [vmem:[%s371_s5] sm:$0xff]  }
   0x5   :  { %265 = vmatprep.subr.bf16.mxu1 %v288_v0  ;;  %v238_v7 = vld [vmem:[%s372_s2] ss:$0 sm:$0xff] }
   0x6   :  { %260 = vmatmul.mubr.msk.bf16.vlgmr.msra.gmra.mrb[0].mxu0 %vm48_vm1, %v32_v3  ;;  %v241_v16 = vld [vmem:[%s373_s4] ss:$0 sm:$0xff] }
   0x7   :  { %275 = vmatprep.mubr.msk.bf16.mxu0 %vm289_vm0, %v288_v0  ;;  %272 = vmatpush3.bf16.msra.mxu0 %v284_v6  ;;  %v245_v24 = vld [vmem:[%s374_s6] ss:$0 sm:$0xff] }
   0x8   :  { %266 = vmatpush3.bf16.msra.mxu1 %v283_v5  ;;  %273 = vmatprep.subr.bf16.mxu0 %v288_v0 }
   0xb   :  { %274 = vmatpush3.bf16.msra.mxu0 %v285_v15 }
  0xd9   :  { %v86_v8 = vpop.f32.mrb[0].mxu0 }
  0xda   :  { %v87_v9 = vadd.f32 %v238_v7, %v86_v8  ;;  %v261_v10 = vpop.f32.mrb[1].mxu0 }
  0xdb   :  { %v89_v11 = vpop.f32.mrb[2].mxu0 }
  0xdc   :  { %v92_v12 = vmax.f32 %v87_v9, 0.0  ;;  %v262_v13 = vpop.f32.mrb[3].mxu0 }
  0xde   :  { %v93_v14 = vpack.c.bf16 %v92_v12, %v92_v12 }
  0xe0   :  { %268 = vmatmul.mubr.msk.bf16.vlgmr.msra.gmra.mrb[0].mxu1 %vm117_vm2, %v93_v14 }
 0x1b3   :  { %v155_v17 = vpop.f32.mrb[0].mxu1 }
 0x1b4   :  { %v156_v18 = vadd.f32 %v241_v16, %v155_v17  ;;  %v269_v19 = vpop.f32.mrb[1].mxu1 }
 0x1b5   :  { %v158_v20 = vpop.f32.mrb[2].mxu1 }
 0x1b6   :  { %v161_v21 = vmax.f32 %v156_v18, 0.0  ;;  %v270_v22 = vpop.f32.mrb[3].mxu1 }
 0x1b8   :  { %v162_v23 = vpack.c.bf16 %v161_v21, %v161_v21 }
 0x1ba   :  { %276 = vmatmul.mubr.msk.bf16.vlgmr.msra.gmra.mrb[4].mxu0 %vm117_vm2, %v162_v23 }
 0x28d   :  { %v223_v25 = vpop.f32.mrb[4].mxu0 }
 0x28e   :  { %v224_v26 = vadd.f32 %v245_v24, %v223_v25  ;;  %v277_v27 = vpop.f32.mrb[5].mxu0 }
 0x28f   :  { %v226_v28 = vpop.f32.mrb[6].mxu0 }
 0x290   :  { %286 = vtanh.f32 %v224_v26  ;;  %v278_v29 = vpop.f32.mrb[7].mxu0 }
 0x29a   :  { %v287_v31 = vpop.eup %286 }
 0x29b   :  { %v232_v32 = vmul.f32 %v287_v31, %v231_v30 }
 0x29d   :  { %233 = vst [vmem:[%s376_s8] sm:$0xff] %v232_v32 }

</bundles_post_ra>
